<compile_context>
chip_gen: v7x
topology: tpu7x:2x2x1
jax: 0.10.0
libtpu: 0.0.40
codegen_flags: <defaults>
</compile_context>

<pallas_src>
import jax
import jax.numpy as jnp
from jax.experimental import pallas as pl
from jax.experimental.pallas import tpu as pltpu

LANE = 128


def _round_up(n, m):
    return (n + m - 1) // m * m


def spatial_gate_kernel(w_ref, b_ref, x_ref, o_ref):
    # w_ref : (1, C, 1)       per-sample channel weights (f32, VMEM, indexed by batch)
    # b_ref : (B,)            per-sample scalar biases (f32, whole array in SMEM)
    # x_ref : (1, C, TILE_HW) feature-map tile (spatial fused, lane-dense)
    # o_ref : (1, C, TILE_HW)
    x = x_ref[0]                                   # (C, TILE_HW), streaming dtype
    w = w_ref[0]                                   # (C, 1) f32, lane-broadcastable
    b = b_ref[pl.program_id(0)]                    # scalar f32 from SMEM

    C = x.shape[0]
    x32 = x.astype(jnp.float32)

    if C <= 128:
        # Small/medium C: VPU multiply + sublane reduction. Exact f32, and keeps the
        # HBM DMA (not MXU push/pop) as the binding unit for this streaming kernel.
        s = jnp.sum(w * x32, axis=0, keepdims=True) + b                   # (1, TILE_HW)
    else:
        # Large C: channel reduction on the MXU with exact-f32 passes.
        s = jax.lax.dot_general(
            w, x32, (((0,), (0,)), ((), ())),
            preferred_element_type=jnp.float32,
            precision=jax.lax.Precision.HIGHEST) + b                      # (1, TILE_HW)

    scale = jax.nn.sigmoid(s)                                             # (1, TILE_HW), f32 (EUP)

    # Elementwise gate, broadcast over channels; cast the small scale tile down instead
    # of materializing an upcast (C, TILE_HW) f32 temp.
    o_ref[0] = x * scale.astype(x.dtype)


def spatial_gate(x_nchw, mu, wg, bg, wb, bb):
    """x_nchw: (B, C, H, W), mu: (B, Mu). Returns (B, C, H, W) of x_nchw.dtype."""
    B, C, H, W = x_nchw.shape
    HW = H * W
    dtype = x_nchw.dtype
    itemsize = jnp.dtype(dtype).itemsize

    # ---- hoisted dynamic-weight generation (one tiny batched matmul, near-free in XLA) ----
    w = (mu @ wg.T + bg).astype(jnp.float32)            # (B, C)  per-sample channel weights
    b = (mu @ wb.T + bb).astype(jnp.float32).reshape(B) # (B,)    1-D => cheap SMEM footprint
    w_col = w.reshape(B, C, 1)                          # lane-broadcast layout for the kernel

    # ---- per-generation VMEM-aware tile sizing ----
    try:
        vmem_capacity = int(pltpu.get_tpu_info().vmem_capacity_bytes)
    except Exception:
        vmem_capacity = 128 << 20
    small_vmem = vmem_capacity <= (64 << 20)            # v7x-class part (64 MiB / TensorCore)
    block_budget = (4 << 20) if small_vmem else max(vmem_capacity // 8, 8 << 20)
    vmem_cap = (28 << 20) if small_vmem else (96 << 20)

    hw_aligned = _round_up(HW, LANE)
    row_bytes = max(C * itemsize, 1)
    max_tile = max(LANE, (block_budget // row_bytes) // LANE * LANE)
    min_tile = LANE if small_vmem else min(4 * LANE, hw_aligned)          # keep DMA rows >= 2 KiB
    tile_hw = min(max(max_tile, min_tile), hw_aligned)                    # multiple of 128

    # v7x has 2 TensorCores per chip: make sure the parallel grid can occupy both.
    if small_vmem:
        while B * pl.cdiv(HW, tile_hw) < 4 and tile_hw > LANE:
            tile_hw = _round_up(tile_hw // 2, LANE)

    grid_hw = pl.cdiv(HW, tile_hw)   # ragged last tile: OOB reads junk, OOB writes clipped

    x_flat = x_nchw.reshape(B, C, HW)   # free reshape, no pad / slice HBM round-trip

    block_bytes = C * tile_hw * itemsize
    vmem_limit = int(min(max(4 * block_bytes + (1 << 20), 16 << 20), vmem_cap))

    cost = pl.CostEstimate(
        flops=3 * B * C * HW,                      # channel reduction + gate multiply
        transcendentals=B * HW,                    # sigmoid
        bytes_accessed=2 * B * C * HW * itemsize + B * (C + 1) * 4,
    )

    out_flat = pl.pallas_call(
        spatial_gate_kernel,
        out_shape=jax.ShapeDtypeStruct((B, C, HW), dtype),
        grid_spec=pltpu.PrefetchScalarGridSpec(
            num_scalar_prefetch=0,
            grid=(B, grid_hw),
            in_specs=[
                pl.BlockSpec((1, C, 1), lambda bi, j: (bi, 0, 0)),         # w_col (per batch)
                pl.BlockSpec(memory_space=pltpu.MemorySpace.SMEM),         # b, whole 1-D array
                pl.BlockSpec((1, C, tile_hw), lambda bi, j: (bi, 0, j)),   # x tile
            ],
            out_specs=pl.BlockSpec((1, C, tile_hw), lambda bi, j: (bi, 0, j)),
        ),
        compiler_params=pltpu.CompilerParams(
            dimension_semantics=("parallel", "parallel"),
            vmem_limit_bytes=vmem_limit,
        ),
        cost_estimate=cost,
    )(w_col, b, x_flat)

    return out_flat.reshape(B, C, H, W)


def spatial_gate_ref(x, mu, wg, bg, wb, bb):
    # Pure-JAX reference of the same semantics.
    w = mu @ wg.T + bg                                          # (B, C)
    b = mu @ wb.T + bb                                          # (B, 1)
    x_out = jnp.einsum('bc,bchw->bhw', w, x) + b[:, :, None]    # (B, H, W)
    scale = jax.nn.sigmoid(x_out)[:, None, :, :]                # (B, 1, H, W)
    return x * scale


if __name__ == "__main__":
    B, C, H, W = 2, 4, 16, 16          # gate_channels = C
    Mu = 8                             # mu_dim

    key = jax.random.PRNGKey(0)
    kx, kmu, kwg, kbg, kwb, kbb = jax.random.split(key, 6)

    x = jax.random.normal(kx, (B, C, H, W), dtype=jnp.float32)
    mu = jax.random.normal(kmu, (B, Mu), dtype=jnp.float32)

    # Deterministic synthetic parameters for DynamicLinear(gate_channels=C, 1, mu_dim=Mu).
    wg = 0.1 * jax.random.normal(kwg, (C, Mu), dtype=jnp.float32)   # Linear(Mu -> C*1) weight
    bg = 0.1 * jax.random.normal(kbg, (C,), dtype=jnp.float32)
    wb = 0.1 * jax.random.normal(kwb, (1, Mu), dtype=jnp.float32)   # Linear(Mu -> 1) weight
    bb = 0.1 * jax.random.normal(kbb, (1,), dtype=jnp.float32)

    out = spatial_gate(x, mu, wg, bg, wb, bb)
    out = jax.block_until_ready(out)

    ref = spatial_gate_ref(x, mu, wg, bg, wb, bb)
    assert out.shape == (B, C, H, W)
    assert jnp.allclose(out, ref, atol=1e-5, rtol=1e-5), "mismatch vs JAX reference"

    print("KERNEL_OK")
</pallas_src>

<mosaic_0001>
module attributes {stable_mosaic.version = 11 : i64} {
  func.func @spatial_gate_kernel(%arg0: i32, %arg1: i32, %arg2: memref<1x4x1xf32, #tpu.memory_space<vmem>>, %arg3: memref<2xf32, #tpu.memory_space<smem>>, %arg4: memref<1x4x256xf32, #tpu.memory_space<vmem>>, %arg5: memref<1x4x256xf32, #tpu.memory_space<vmem>>) attributes {dimension_semantics = [#tpu.dimension_semantics<parallel>, #tpu.dimension_semantics<parallel>], iteration_bounds = array<i64: 2, 1>, scalar_prefetch = 0 : i64, scratch_operands = 0 : i64, tpu.core_type = #tpu.core_type<tc>, window_params = [{transform_indices = @transform_0, window_bounds = array<i64: 1, 4, 1>}, {transform_indices = @transform_1, window_bounds = array<i64: 2>}, {transform_indices = @transform_2, window_bounds = array<i64: 1, 4, 256>}, {transform_indices = @transform_3, window_bounds = array<i64: 1, 4, 256>}]} {
    %c0 = arith.constant 0 : index
    %c0_0 = arith.constant 0 : index
    %c0_1 = arith.constant 0 : index
    %0 = vector.load %arg4[%c0, %c0_0, %c0_1] : memref<1x4x256xf32, #tpu.memory_space<vmem>>, vector<1x4x256xf32>
    %1 = vector.shape_cast %0 : vector<1x4x256xf32> to vector<4x256xf32>
    %c0_2 = arith.constant 0 : index
    %c0_3 = arith.constant 0 : index
    %c0_4 = arith.constant 0 : index
    %2 = vector.load %arg2[%c0_2, %c0_3, %c0_4] : memref<1x4x1xf32, #tpu.memory_space<vmem>>, vector<1x4x1xf32>
    %3 = vector.shape_cast %2 : vector<1x4x1xf32> to vector<4x1xf32>
    %4 = arith.index_cast %arg0 : i32 to index
    %5 = memref.load %arg3[%4] : memref<2xf32, #tpu.memory_space<smem>>
    %6 = vector.broadcast %3 : vector<4x1xf32> to vector<4x256xf32>
    %7 = arith.mulf %6, %1 : vector<4x256xf32>
    %cst = arith.constant dense<0.000000e+00> : vector<256xf32>
    %8 = vector.multi_reduction <add>, %7, %cst [0] : vector<4x256xf32> to vector<256xf32>
    %9 = vector.shape_cast %8 : vector<256xf32> to vector<1x256xf32>
    %10 = vector.broadcast %5 : f32 to vector<1x256xf32>
    %11 = arith.addf %9, %10 : vector<1x256xf32>
    %12 = arith.negf %11 : vector<1x256xf32>
    %13 = math.exp %12 : vector<1x256xf32>
    %cst_5 = arith.constant 1.000000e+00 : f32
    %14 = vector.broadcast %cst_5 : f32 to vector<1x256xf32>
    %15 = arith.addf %14, %13 : vector<1x256xf32>
    %16 = arith.divf %14, %15 : vector<1x256xf32>
    %17 = vector.broadcast %16 : vector<1x256xf32> to vector<4x256xf32>
    %18 = arith.mulf %1, %17 : vector<4x256xf32>
    %c0_6 = arith.constant 0 : index
    %c0_7 = arith.constant 0 : index
    %c0_8 = arith.constant 0 : index
    %19 = vector.load %arg5[%c0_6, %c0_7, %c0_8] : memref<1x4x256xf32, #tpu.memory_space<vmem>>, vector<1x4x256xf32>
    %20 = vector.shape_cast %19 : vector<1x4x256xf32> to vector<4x256xf32>
    %21 = vector.shape_cast %18 : vector<4x256xf32> to vector<1x4x256xf32>
    tpu.vector_store %arg5[%c0_6, %c0_7, %c0_8], %21 {strides = array<i32>} : memref<1x4x256xf32, #tpu.memory_space<vmem>>, vector<1x4x256xf32>,
    return
  }
  func.func @transform_0(%arg0: i32, %arg1: i32) -> (i32, i32, i32) {
    %c0_i32 = arith.constant 0 : i32
    %c0_i32_0 = arith.constant 0 : i32
    %c0_i32_1 = arith.constant 0 : i32
    return %arg0, %c0_i32, %c0_i32_0 : i32, i32, i32
  }
  func.func @transform_1(%arg0: i32, %arg1: i32) -> i32 {
    %c0_i32 = arith.constant 0 : i32
    %c0_i32_0 = arith.constant 0 : i32
    return %c0_i32 : i32
  }
  func.func @transform_2(%arg0: i32, %arg1: i32) -> (i32, i32, i32) {
    %c0_i32 = arith.constant 0 : i32
    %c0_i32_0 = arith.constant 0 : i32
    return %arg0, %c0_i32, %arg1 : i32, i32, i32
  }
  func.func @transform_3(%arg0: i32, %arg1: i32) -> (i32, i32, i32) {
    %c0_i32 = arith.constant 0 : i32
    %c0_i32_0 = arith.constant 0 : i32
    return %arg0, %c0_i32, %arg1 : i32, i32, i32
  }
}

</mosaic_0001>

<bundles_post_ra>
// kernel: tpu_custom_call.1
= control target key start
LH: loop header
LB: loop body
LE: loop exit
PB: predicated region body
PF: predicated region fallthrough
CT: control target
= control target key end

     0   :  { %8 = vsyncpa [#allocation4], 0  ;;  %s753_s0 = inlined_call_operand.vmem [shape: f32[2,4,1], index: 0, kind: input, shape index: {}]   ;;  %s754_s1 = inlined_call_operand.vmem [shape: f32[2], index: 1, kind: input, shape index: {}]   ;;  %s755_s2 = inlined_call_operand.vmem [shape: f32[2,4,256], index: 2, kind: input, shape index: {}]   ;;  %s756_s3 = inlined_call_operand.hbm [shape: f32[2,4,256], index: 3, kind: output, shape index: {}]  }
   0x1   :  { %9 = vsyncpa [#allocation3], 0 }
   0x2   :  { %11 = vsyncpa [#allocation3 + $0x1], 0  ;;  %s616_s12 = smov 0   ;;  %s618_s13 = smov 0  }
   0x3   :  { %s620_s14 = smov 0   ;;  %s622_s15 = smov 0  }
   0x4   :  { %s624_s16 = smov 0   ;;  %s626_s17 = smov 0  }
   0x5 LB: > { %s397_s18 = sadd.s32 4294967295, %s591_s17   ;;  %s398_s19 = sadd.s32 4294967294, %s591_s17   ;;  %s591_s17 = sphi %s626_s17, %s17_s17   ;;  %s587_s16 = sphi %s624_s16, %s765_s16   ;;  %s583_s15 = sphi %s622_s15, %s764_s15   ;;  %s579_s14 = sphi %s620_s14, %s763_s14   ;;  %s575_s13 = sphi %s618_s13, %s762_s13   ;;  %s571_s12 = sphi %s616_s12, %s761_s12  }
   0x6   : > { %s29_s20 = sadd.s32 1, %s587_s16  ;;  %s113_s21 = sadd.s32 1, %s579_s14 }
   0x7   : > { %p31_p0 = scmp.ge.s32.totalorder %s29_s20, 2  ;;  %p123_p1 = scmp.ne.s32.totalorder %s579_s14, %s575_s13 }
   0x8   : > { %p124_p2 = scmp.eq.s32.totalorder %s397_s18, 1  ;;  %p129_p3 = scmp.ne.s32.totalorder %s575_s13, %s571_s12 }
   0x9   : > { %s767_s20 = smov (%p31_p0, %s29_s20), 0  ;;  %p130_p5 = scmp.eq.s32.totalorder %s398_s19, 1 }
   0xa   : > { %p656_p4 = por %p124_p2, %p123_p1  ;;  %s108_s23 = ssub.s32 %s587_s16, %s767_s20 }
   0xb   : > { %p399_p6 = scmp.ge.s32.totalorder %s591_s17, 1  ;;  %p111_p7 = scmp.eq.s32.totalorder %s108_s23, 0 }
   0xc   : > { %p663_p8 = por %p130_p5, %p129_p3  ;;  %p137_p9 = scmp.lt.s32.totalorder %s591_s17, 3 }
   0xd   : > { %s669_s25 = scalar_select %p111_p7, %s579_s14, %s113_s21  }
   0xe   : > { %p671_p10 = pnand %p399_p6, %p137_p9  ;;  %p675_p11 = scmp.eq.s32.totalorder %s397_s18, 0 }
   0xf   : > { %s150_s30 = sshll.u32 %s754_s1, 4  ;;  %s151_s30 = int_to_ptr.vmem [resolvable:$true] %s150_s30 }
  0x10   : > { %p423_p12 = pneg %p671_p10  ;;  %s494_s4 = scalar_lea.vmem %s151_s30, 16 }
  0x11   : > { %p495_p0 = scmp.ne.s32.totalorder %s151_s30, %s494_s4  ;;  %p502_p5 = scmp.lt.s32.totalorder %s151_s30, %s151_s30 }
  0x12   : > { %p424_p13 = pnand %p675_p11, %p423_p12  ;;  %p503_p6 = scmp.lt.s32.totalorder %s494_s4, %s494_s4 }
  0x14   : > { %p496_p1 = pneg %p424_p13  ;;  %p504_p7 = por %p503_p6, %p502_p5 }
  0x16   : > { %p497_p2 = pnand %p496_p1, %p495_p0 }
  0x18   : > { %p498_p3 = pneg %p497_p2 }
  0x1a   : > { %p505_p9 = pnand %p504_p7, %p498_p3 }
  0x1c   : > { %508 = shalt.err (!%p505_p9)
}
  0x1d   : > { %s593_s5 = smov [#allocation2]   ;;  %183 = sbr.rel (%p671_p10) target bundleno = 236 (0xec), region = 32 }
  0x1e   : > { %426 = dma.vmem_to_smem (!%p424_p13), %s151_s30, 16, %s593_s5, [#allocation4]  }
  0x24   : > { %562 = dma.done.wait (%p675_p11), [#allocation4], 16  }
  0x25   : > { %564 = vsyncadd (%p675_p11), [#allocation4], 4294967280 }
  0x26   : > { %189 = sfence }
  0x27   : > { %p216_p12 = scmp.lt.s32.totalorder %s583_s15, 1  ;;  %v594_v0 = vmov 0   ;;  %vm244_vm0 = vcmask 1043456   ;;  %s233_s23 = sld [smem:[#allocation2 + %s583_s15]] }
  0x28   : > { %484 = vset.pattern.permute.xlu0 %v594_v0  ;;  %s213_s26 = sand.u32 1, %s575_s13   ;;  %s416_s28 = sshll.u32 %s583_s15, 7 }
  0x29   : > { %s217_s6 = scalar_select %p216_p12, %s583_s15, 1 }
  0x2a   : > { %s404_s27 = sshll.u32 %s213_s26, 3  ;;  %s595_s15 = smov [#allocation5]  }
  0x2b   : > { %s405_s7 = sshll.u32 %s217_s6, 2  ;;  %s415_s11 = sshll.u32 %s217_s6, 3 }
  0x2c   : > { %s219_s10 = scalar_lea.vmem %s753_s0, %s405_s7  ;;  %s228_s21 = scalar_lea.vmem %s755_s2, %s415_s11 }
  0x2d   : > { %v232_v1 = vld [vmem:[%s219_s10] sm:$0xf]  ;;  %v259_v19 = vstv %s233_s23  ;;  %s215_s29 = scalar_lea.vmem [#allocation5], %s404_s27  ;;  %s706_s6 = scalar_lea.hbm %s756_s3, %s416_s28 }
  0x2e   : > { %236 = vperm.xlu0 %484, %v232_v1   ;;  %v231_v2 = vld [vmem:[%s228_s21] sm:$0xff]  ;;  %s297_s30 = sshll.u32 %s215_s29, 4  ;;  %s281_s7 = scalar_lea.sflag [#allocation3], %s213_s26  ;;  %s708_s30 = int_to_ptr.vmem [resolvable:$true] %s297_s30 }
  0x2f   : > { %v240_v3 = vcombine.high %v231_v2, %v231_v2  ;;  %s509_s8 = scalar_lea.vmem %s708_s30, 128  ;;  %s513_s9 = sshll.u32 %s595_s15, 4  ;;  %s514_s9 = int_to_ptr.vmem [resolvable:$false] %s513_s9 }
  0x30   : > { %p510_p10 = scmp.ne.s32.totalorder %s708_s30, %s509_s8  ;;  %s515_s10 = scalar_lea.vmem %s514_s9, 256 }
  0x31   : > { %p516_p0 = scmp.lt.s32.totalorder %s708_s30, %s514_s9  ;;  %p517_p1 = scmp.lt.s32.totalorder %s515_s10, %s509_s8 }
  0x32   : > { %p511_p11 = pnand %p510_p10, %p656_p4 }
  0x33   : > { %p518_p2 = por %p517_p1, %p516_p0 }
  0x34   : > { %p512_p13 = pneg %p511_p11 }
  0x36   : > { %p519_p3 = pnand %p518_p2, %p512_p13 }
  0xad   : > { %v237_v4 = vpop.permute.xlu0 %236 }
  0xae   : > { %v242_v5 = vmul.f32 %v237_v4, %v231_v2  ;;  %v243_v6 = vmul.f32 %v240_v3, %v237_v4 }
  0xb0   : > { %v245_v7 = vsel %vm244_vm0, %v242_v5, 0.0  ;;  %v252_v8 = vsel %vm244_vm0, %v243_v6, 0.0 }
  0xb1   : > { %v246_v9 = vrot.slane %v245_v7, 4  ;;  %v253_v10 = vrot.slane %v252_v8, 4 }
  0xb3   : > { %v247_v11 = vadd.f32 %v246_v9, %v245_v7  ;;  %v254_v12 = vadd.f32 %v253_v10, %v252_v8 }
  0xb5   : > { %v248_v13 = vrot.slane %v247_v11, 2  ;;  %v255_v14 = vrot.slane %v254_v12, 2 }
  0xb7   : > { %v249_v15 = vadd.f32 %v248_v13, %v247_v11  ;;  %v256_v16 = vadd.f32 %v255_v14, %v254_v12 }
  0xb9   : > { %v250_v17 = vrot.slane %v249_v15, 1  ;;  %v257_v18 = vrot.slane %v256_v16, 1 }
  0xbb   : > { %v251_v20 = vadd.f32 %v250_v17, %v249_v15  ;;  %v258_v21 = vadd.f32 %v257_v18, %v256_v16 }
  0xbd   : > { %v260_v22 = vadd.f32 %v259_v19, %v251_v20  ;;  %v261_v23 = vadd.f32 %v259_v19, %v258_v21 }
  0xbf   : > { %v408_v24 = vmul.f32 -1.442695, %v260_v22  ;;  %v409_v25 = vmul.f32 -1.442695, %v261_v23 }
  0xc1   : > { %486 = vpow2.f32 %v408_v24 }
  0xc2   : > { %488 = vpow2.f32 %v409_v25 }
  0xcb   : > { %v487_v26 = vpop.eup %486 }
  0xcc   : > { %v489_v27 = vpop.eup %488  ;;  %v268_v28 = vadd.f32 1.0, %v487_v26 }
  0xcd   : > { %v269_v29 = vadd.f32 1.0, %v489_v27 }
  0xce   : > { %490 = vrcp.f32 %v268_v28 }
  0xcf   : > { %492 = vrcp.f32 %v269_v29 }
  0xd8   : > { %v491_v30 = vpop.eup %490 }
  0xd9   : > { %v493_v31 = vpop.eup %492 }
  0xda   : > { %v276_v32 = vcombine.low %v491_v30, %v493_v31 }
  0xdc   : > { %v278_v33 = vmul.f32 %v276_v32, %v231_v2 }
  0xde   : > { %279 = vst [vmem:[%s215_s29] sm:$0xff] %v278_v33 }
  0xdf   : > { %522 = shalt.err (!%p519_p3)
}
  0xe0   : > { %s523_s11 = scalar_lea.hbm %s706_s6, 128  ;;  %s527_s21 = scalar_lea.hbm %s756_s3, 256 }
  0xe1   : > { %p524_p5 = scmp.ne.s32.totalorder %s706_s6, %s523_s11  ;;  %p528_p9 = scmp.lt.u32.totalorder %s706_s6, %s756_s3 }
  0xe2   : > { %p529_p12 = scmp.lt.u32.totalorder %s527_s21, %s523_s11  ;;  %p531_p11 = scmp.lt.u32.totalorder %s523_s11, %s706_s6 }
  0xe3   : > { %p525_p6 = pnand %p524_p5, %p656_p4 }
  0xe4   : > { %p530_p10 = por %p529_p12, %p528_p9 }
  0xe5   : > { %p526_p7 = pneg %p525_p6 }
  0xe6   : > { %p532_p13 = por %p531_p11, %p530_p10 }
  0xe8   : > { %p533_p0 = pnand %p532_p13, %p526_p7 }
  0xea   : > { %536 = shalt.err (!%p533_p0)
}
  0xeb   : > { %421 = dma.vmem_to_hbm [thread:$0]  (%p656_p4), %s708_s30, 128, %s706_s6, %s281_s7  }
  0xec PF: > { %p433_p1 = scmp.ge.s32.totalorder %s591_s17, 2  ;;  %s309_s27 = sand.u32 1, %s571_s12  }
  0xed   : > { %s310_s28 = scalar_lea.sflag [#allocation3], %s309_s27 }
  0xee   : > { %p428_p2 = pnand %p433_p1, %p663_p8 }
  0xf0   : > { %566 = dma.done.wait (!%p428_p2), %s310_s28, 128  }
  0xf1   : > { %568 = vsyncadd (!%p428_p2), %s310_s28, 4294967168  ;;  %s17_s17 = sadd.s32 1, %s591_s17   ;;  %s761_s12 = smov %s575_s13 }
  0xf2   : > { %p14_p3 = scmp.ge.s32.totalorder %s17_s17, 4   ;;  %s762_s13 = smov %s579_s14 }
  0xf3   : > { %s763_s14 = smov %s669_s25  ;;  %s764_s15 = smov %s587_s16 }
  0xf4   : > { %s765_s16 = smov %s767_s20  ;;  %16 = sbr.rel (!%p14_p3) target bundleno = 5 (0x5), region = 75 }
  0xfb   :  { %315 = vsyncpa [#allocation3], 1 }
  0xfc   :  { %317 = vsyncpa [#allocation3 + $0x1], 1 }
  0xfd   :  { %318 = vsyncpa [#allocation4], 1 }
  0xfe   :  { %320 = vsyncpa [#allocation4 + $0x1], 1 }

</bundles_post_ra>
